<compile_context>
chip_gen: v6e
topology: v6e:2x2x1
jax: 0.10.0
libtpu: 0.0.40
codegen_flags: <defaults>
</compile_context>

<pallas_src>
import math
import functools

import jax
import jax.numpy as jnp
from jax.experimental import pallas as pl
from jax.experimental.pallas import tpu as pltpu


def _mha_kernel(q_ref, k_ref, v_ref, wqkv_ref, bqkv_ref, wo_ref, bo_ref, o_ref,
                *, heads: int):
    """One grid step = one batch element.

    Ref shapes (per step):
      q_ref/k_ref/v_ref : (1, S, D)
      wqkv_ref          : (3, H, D, d_k)   [q | k | v] per-head projection weights (in, out)
      bqkv_ref          : (3, H, 1, d_k)
      wo_ref            : (H, d_k, D)      per-head rows of Wo^T
      bo_ref            : (1, D)
      o_ref             : (1, S, D)
    """
    xq = q_ref[0]                      # (S, D)
    xk = k_ref[0]
    xv = v_ref[0]

    w_qkv = wqkv_ref[...]              # (3, H, D, d_k)  (tiny; load once)
    b_qkv = bqkv_ref[...]              # (3, H, 1, d_k)
    w_o = wo_ref[...]                  # (H, d_k, D)

    out = None
    for h in range(heads):             # static unroll: pure compute + accumulate, no concats
        # Per-head projections (1/sqrt(d_k) already folded into the q weights/bias).
        qh = jnp.dot(xq, w_qkv[0, h], preferred_element_type=jnp.float32) + b_qkv[0, h]
        kh = jnp.dot(xk, w_qkv[1, h], preferred_element_type=jnp.float32) + b_qkv[1, h]
        vh = jnp.dot(xv, w_qkv[2, h], preferred_element_type=jnp.float32) + b_qkv[2, h]

        # scores = qh @ kh^T, expressed via dimension_numbers (no explicit transpose).
        s = jax.lax.dot_general(qh, kh, (((1,), (1,)), ((), ())),
                                preferred_element_type=jnp.float32)        # (S, S)

        # Numerically stable softmax, f32 elementwise chain, exact divide.
        s = s - jnp.max(s, axis=-1, keepdims=True)
        e = jnp.exp(s)
        p = e / jnp.sum(e, axis=-1, keepdims=True)
        # TODO(synk): training-mode dropout on `p` not implemented (eval mode).

        ctx = jnp.dot(p, vh, preferred_element_type=jnp.float32)           # (S, d_k)

        # Head-merge folded into the output projection as an accumulation.
        contrib = jnp.dot(ctx, w_o[h], preferred_element_type=jnp.float32)  # (S, D)
        out = contrib if out is None else out + contrib

    o_ref[0] = (out + bo_ref[...]).astype(o_ref.dtype)


def pack_params(params, heads: int):
    """Pack PyTorch-layout Linear params into the kernel layout.

    Call once at parameter-load time (not per forward call).  PyTorch Linear computes
    x @ W.T + b with W of shape (out, in); head h owns output columns [h*d_k, (h+1)*d_k).
    1/sqrt(d_k) is folded into the query projection so the kernel needs no score scaling.
    """
    D = params["wq"].shape[0]
    assert D % heads == 0
    d_k = D // heads
    inv = 1.0 / math.sqrt(d_k)

    def split_w(w_t):                         # (D_in, D_out) -> (H, D_in, d_k)
        return w_t.reshape(D, heads, d_k).transpose(1, 0, 2)

    def split_b(b):                           # (D,) -> (H, 1, d_k)
        return b.reshape(heads, 1, d_k)

    w_qkv = jnp.stack([split_w(params["wq"].T) * inv,
                       split_w(params["wk"].T),
                       split_w(params["wv"].T)])            # (3, H, D, d_k)
    b_qkv = jnp.stack([split_b(params["bq"]) * inv,
                       split_b(params["bk"]),
                       split_b(params["bv"])])              # (3, H, 1, d_k)
    w_o = params["wo"].T.reshape(heads, d_k, D)             # (H, d_k, D)
    b_o = params["bo"].reshape(1, D)                        # (1, D)
    return {"w_qkv": w_qkv, "b_qkv": b_qkv, "w_o": w_o, "b_o": b_o}


def multi_head_attention(q, k, v, packed, *, heads: int):
    """q, k, v: (B, S, D) float32; `packed` from pack_params()."""
    B, S, D = q.shape
    assert k.shape == (B, S, D) and v.shape == (B, S, D)
    d_k = D // heads

    kernel = functools.partial(_mha_kernel, heads=heads)

    # Real work only (no zero-padded blocks):
    flops = B * (3 * 2 * S * D * D        # q/k/v projections
                 + 2 * 2 * S * S * D      # scores + weighted sum (all heads)
                 + 2 * S * D * D)         # output projection
    bytes_accessed = 4 * (3 * B * S * D   # q, k, v in
                          + B * S * D     # out
                          + 4 * D * D     # w_qkv + w_o
                          + 4 * D)        # biases
    cost = pl.CostEstimate(flops=flops,
                           transcendentals=B * heads * S * S,   # exp
                           bytes_accessed=bytes_accessed)

    return pl.pallas_call(
        kernel,
        out_shape=jax.ShapeDtypeStruct((B, S, D), q.dtype),
        grid_spec=pltpu.PrefetchScalarGridSpec(
            num_scalar_prefetch=0,
            grid=(B,),
            in_specs=[
                pl.BlockSpec((1, S, D), lambda b: (b, 0, 0)),
                pl.BlockSpec((1, S, D), lambda b: (b, 0, 0)),
                pl.BlockSpec((1, S, D), lambda b: (b, 0, 0)),
                pl.BlockSpec((3, heads, D, d_k), lambda b: (0, 0, 0, 0)),
                pl.BlockSpec((3, heads, 1, d_k), lambda b: (0, 0, 0, 0)),
                pl.BlockSpec((heads, d_k, D), lambda b: (0, 0, 0)),
                pl.BlockSpec((1, D), lambda b: (0, 0)),
            ],
            out_specs=pl.BlockSpec((1, S, D), lambda b: (b, 0, 0)),
        ),
        compiler_params=pltpu.CompilerParams(
            dimension_semantics=("parallel",)),   # batch axis: both TCs on v7x
        cost_estimate=cost,
    )(q, k, v, packed["w_qkv"], packed["b_qkv"], packed["w_o"], packed["b_o"])


def _reference(q, k, v, params, *, heads: int):
    """Plain-JAX reference mirroring the PyTorch forward (eval mode, no mask)."""
    B, S, D = q.shape
    d_k = D // heads
    with jax.default_matmul_precision("float32"):
        def lin(x, w, b):
            return x @ w.T + b

        qp = lin(q, params["wq"], params["bq"]).reshape(B, S, heads, d_k).transpose(0, 2, 1, 3)
        kp = lin(k, params["wk"], params["bk"]).reshape(B, S, heads, d_k).transpose(0, 2, 1, 3)
        vp = lin(v, params["wv"], params["bv"]).reshape(B, S, heads, d_k).transpose(0, 2, 1, 3)

        scores = jnp.einsum("bhqd,bhkd->bhqk", qp, kp) / math.sqrt(d_k)
        probs = jax.nn.softmax(scores, axis=-1)
        out_h = jnp.einsum("bhqk,bhkd->bhqd", probs, vp)
        concat = out_h.transpose(0, 2, 1, 3).reshape(B, S, D)
        return lin(concat, params["wo"], params["bo"])


if __name__ == "__main__":
    B, S, D, H = 2, 8, 32, 4  # batch, seq, d_model, heads

    key = jax.random.PRNGKey(0)
    keys = jax.random.split(key, 12)

    def xavier(k, shape):
        fan_out, fan_in = shape
        std = math.sqrt(2.0 / (fan_in + fan_out))
        return std * jax.random.normal(k, shape, dtype=jnp.float32)

    params = {
        "wq": xavier(keys[0], (D, D)), "bq": 0.1 * jax.random.normal(keys[7], (D,), jnp.float32),
        "wk": xavier(keys[1], (D, D)), "bk": 0.1 * jax.random.normal(keys[8], (D,), jnp.float32),
        "wv": xavier(keys[2], (D, D)), "bv": 0.1 * jax.random.normal(keys[9], (D,), jnp.float32),
        "wo": xavier(keys[3], (D, D)), "bo": 0.1 * jax.random.normal(keys[10], (D,), jnp.float32),
    }

    q = jax.random.normal(keys[4], (B, S, D), dtype=jnp.float32)
    k = jax.random.normal(keys[5], (B, S, D), dtype=jnp.float32)
    v = jax.random.normal(keys[6], (B, S, D), dtype=jnp.float32)

    packed = pack_params(params, H)   # pack once (parameter-load time), not per call

    out = multi_head_attention(q, k, v, packed, heads=H)
    out = jax.block_until_ready(out)

    ref = _reference(q, k, v, params, heads=H)
    assert out.shape == (B, S, D)
    err = float(jnp.max(jnp.abs(out - ref)))
    assert jnp.allclose(out, ref, atol=1e-3, rtol=1e-3), \
        f"mismatch vs reference, max|diff|={err}"

    print("KERNEL_OK")
</pallas_src>

<mosaic_0001>
module attributes {stable_mosaic.version = 11 : i64} {
  func.func @_mha_kernel(%arg0: i32, %arg1: memref<1x8x32xf32, #tpu.memory_space<vmem>>, %arg2: memref<1x8x32xf32, #tpu.memory_space<vmem>>, %arg3: memref<1x8x32xf32, #tpu.memory_space<vmem>>, %arg4: memref<3x4x32x8xf32, #tpu.memory_space<vmem>>, %arg5: memref<3x4x1x8xf32, #tpu.memory_space<vmem>>, %arg6: memref<4x8x32xf32, #tpu.memory_space<vmem>>, %arg7: memref<1x32xf32, #tpu.memory_space<vmem>>, %arg8: memref<1x8x32xf32, #tpu.memory_space<vmem>>) attributes {dimension_semantics = [#tpu.dimension_semantics<parallel>], iteration_bounds = array<i64: 2>, scalar_prefetch = 0 : i64, scratch_operands = 0 : i64, tpu.core_type = #tpu.core_type<tc>, window_params = [{transform_indices = @transform_0, window_bounds = array<i64: 1, 8, 32>}, {transform_indices = @transform_1, window_bounds = array<i64: 1, 8, 32>}, {transform_indices = @transform_2, window_bounds = array<i64: 1, 8, 32>}, {pipeline_mode = #tpu.pipeline_mode<synchronous>, transform_indices = @transform_3, window_bounds = array<i64: 3, 4, 32, 8>}, {pipeline_mode = #tpu.pipeline_mode<synchronous>, transform_indices = @transform_4, window_bounds = array<i64: 3, 4, 1, 8>}, {pipeline_mode = #tpu.pipeline_mode<synchronous>, transform_indices = @transform_5, window_bounds = array<i64: 4, 8, 32>}, {pipeline_mode = #tpu.pipeline_mode<synchronous>, transform_indices = @transform_6, window_bounds = array<i64: 1, 32>}, {transform_indices = @transform_7, window_bounds = array<i64: 1, 8, 32>}]} {
    %c0 = arith.constant 0 : index
    %c0_0 = arith.constant 0 : index
    %c0_1 = arith.constant 0 : index
    %0 = vector.load %arg1[%c0, %c0_0, %c0_1] : memref<1x8x32xf32, #tpu.memory_space<vmem>>, vector<1x8x32xf32>
    %1 = vector.shape_cast %0 : vector<1x8x32xf32> to vector<8x32xf32>
    %c0_2 = arith.constant 0 : index
    %c0_3 = arith.constant 0 : index
    %c0_4 = arith.constant 0 : index
    %2 = vector.load %arg2[%c0_2, %c0_3, %c0_4] : memref<1x8x32xf32, #tpu.memory_space<vmem>>, vector<1x8x32xf32>
    %3 = vector.shape_cast %2 : vector<1x8x32xf32> to vector<8x32xf32>
    %c0_5 = arith.constant 0 : index
    %c0_6 = arith.constant 0 : index
    %c0_7 = arith.constant 0 : index
    %4 = vector.load %arg3[%c0_5, %c0_6, %c0_7] : memref<1x8x32xf32, #tpu.memory_space<vmem>>, vector<1x8x32xf32>
    %5 = vector.shape_cast %4 : vector<1x8x32xf32> to vector<8x32xf32>
    %c0_8 = arith.constant 0 : index
    %c0_9 = arith.constant 0 : index
    %c0_10 = arith.constant 0 : index
    %c0_11 = arith.constant 0 : index
    %6 = vector.load %arg4[%c0_8, %c0_9, %c0_10, %c0_11] : memref<3x4x32x8xf32, #tpu.memory_space<vmem>>, vector<3x4x32x8xf32>
    %c0_12 = arith.constant 0 : index
    %c0_13 = arith.constant 0 : index
    %c0_14 = arith.constant 0 : index
    %c0_15 = arith.constant 0 : index
    %7 = vector.load %arg5[%c0_12, %c0_13, %c0_14, %c0_15] : memref<3x4x1x8xf32, #tpu.memory_space<vmem>>, vector<3x4x1x8xf32>
    %c0_16 = arith.constant 0 : index
    %c0_17 = arith.constant 0 : index
    %c0_18 = arith.constant 0 : index
    %8 = vector.load %arg6[%c0_16, %c0_17, %c0_18] : memref<4x8x32xf32, #tpu.memory_space<vmem>>, vector<4x8x32xf32>
    %9 = vector.extract_strided_slice %6 {offsets = [0, 0, 0, 0], sizes = [1, 1, 32, 8], strides = [1, 1, 1, 1]} : vector<3x4x32x8xf32> to vector<1x1x32x8xf32>
    %10 = vector.shape_cast %9 : vector<1x1x32x8xf32> to vector<32x8xf32>
    %cst = arith.constant dense<0.000000e+00> : vector<8x8xf32>
    %11 = tpu.matmul %1, %10, %cst {dimension_numbers = #tpu.dot_dimension_numbers<[1], [0], [0], [1], [0, 0, 1, 1], [], []>} : vector<8x32xf32>, vector<32x8xf32>, vector<8x8xf32> -> vector<8x8xf32>
    %12 = vector.extract_strided_slice %7 {offsets = [0, 0, 0, 0], sizes = [1, 1, 1, 8], strides = [1, 1, 1, 1]} : vector<3x4x1x8xf32> to vector<1x1x1x8xf32>
    %13 = vector.shape_cast %12 : vector<1x1x1x8xf32> to vector<1x8xf32>
    %14 = vector.broadcast %13 : vector<1x8xf32> to vector<8x8xf32>
    %15 = arith.addf %11, %14 : vector<8x8xf32>
    %16 = vector.extract_strided_slice %6 {offsets = [1, 0, 0, 0], sizes = [1, 1, 32, 8], strides = [1, 1, 1, 1]} : vector<3x4x32x8xf32> to vector<1x1x32x8xf32>
    %17 = vector.shape_cast %16 : vector<1x1x32x8xf32> to vector<32x8xf32>
    %cst_19 = arith.constant dense<0.000000e+00> : vector<8x8xf32>
    %18 = tpu.matmul %3, %17, %cst_19 {dimension_numbers = #tpu.dot_dimension_numbers<[1], [0], [0], [1], [0, 0, 1, 1], [], []>} : vector<8x32xf32>, vector<32x8xf32>, vector<8x8xf32> -> vector<8x8xf32>
    %19 = vector.extract_strided_slice %7 {offsets = [1, 0, 0, 0], sizes = [1, 1, 1, 8], strides = [1, 1, 1, 1]} : vector<3x4x1x8xf32> to vector<1x1x1x8xf32>
    %20 = vector.shape_cast %19 : vector<1x1x1x8xf32> to vector<1x8xf32>
    %21 = vector.broadcast %20 : vector<1x8xf32> to vector<8x8xf32>
    %22 = arith.addf %18, %21 : vector<8x8xf32>
    %23 = vector.extract_strided_slice %6 {offsets = [2, 0, 0, 0], sizes = [1, 1, 32, 8], strides = [1, 1, 1, 1]} : vector<3x4x32x8xf32> to vector<1x1x32x8xf32>
    %24 = vector.shape_cast %23 : vector<1x1x32x8xf32> to vector<32x8xf32>
    %cst_20 = arith.constant dense<0.000000e+00> : vector<8x8xf32>
    %25 = tpu.matmul %5, %24, %cst_20 {dimension_numbers = #tpu.dot_dimension_numbers<[1], [0], [0], [1], [0, 0, 1, 1], [], []>} : vector<8x32xf32>, vector<32x8xf32>, vector<8x8xf32> -> vector<8x8xf32>
    %26 = vector.extract_strided_slice %7 {offsets = [2, 0, 0, 0], sizes = [1, 1, 1, 8], strides = [1, 1, 1, 1]} : vector<3x4x1x8xf32> to vector<1x1x1x8xf32>
    %27 = vector.shape_cast %26 : vector<1x1x1x8xf32> to vector<1x8xf32>
    %28 = vector.broadcast %27 : vector<1x8xf32> to vector<8x8xf32>
    %29 = arith.addf %25, %28 : vector<8x8xf32>
    %cst_21 = arith.constant dense<0.000000e+00> : vector<8x8xf32>
    %30 = tpu.matmul %15, %22, %cst_21 {dimension_numbers = #tpu.dot_dimension_numbers<[1], [1], [0], [0], [0, 0, 1, 0], [], []>} : vector<8x8xf32>, vector<8x8xf32>, vector<8x8xf32> -> vector<8x8xf32>
    %cst_22 = arith.constant dense<0xFF800000> : vector<8xf32>
    %31 = vector.multi_reduction <maximumf>, %30, %cst_22 [1] : vector<8x8xf32> to vector<8xf32>
    %32 = vector.shape_cast %31 : vector<8xf32> to vector<8x1xf32>
    %33 = vector.broadcast %32 : vector<8x1xf32> to vector<8x8xf32>
    %34 = arith.subf %30, %33 : vector<8x8xf32>
    %35 = math.exp %34 : vector<8x8xf32>
    %cst_23 = arith.constant dense<0.000000e+00> : vector<8xf32>
    %36 = vector.multi_reduction <add>, %35, %cst_23 [1] : vector<8x8xf32> to vector<8xf32>
    %37 = vector.shape_cast %36 : vector<8xf32> to vector<8x1xf32>
    %38 = vector.broadcast %37 : vector<8x1xf32> to vector<8x8xf32>
    %39 = arith.divf %35, %38 : vector<8x8xf32>
    %cst_24 = arith.constant dense<0.000000e+00> : vector<8x8xf32>
    %40 = tpu.matmul %39, %29, %cst_24 {dimension_numbers = #tpu.dot_dimension_numbers<[1], [0], [0], [1], [0, 0, 1, 1], [], []>} : vector<8x8xf32>, vector<8x8xf32>, vector<8x8xf32> -> vector<8x8xf32>
    %41 = vector.extract_strided_slice %8 {offsets = [0, 0, 0], sizes = [1, 8, 32], strides = [1, 1, 1]} : vector<4x8x32xf32> to vector<1x8x32xf32>
    %42 = vector.shape_cast %41 : vector<1x8x32xf32> to vector<8x32xf32>
    %cst_25 = arith.constant dense<0.000000e+00> : vector<8x32xf32>
    %43 = tpu.matmul %40, %42, %cst_25 {dimension_numbers = #tpu.dot_dimension_numbers<[1], [0], [0], [1], [0, 0, 1, 1], [], []>} : vector<8x8xf32>, vector<8x32xf32>, vector<8x32xf32> -> vector<8x32xf32>
    %44 = vector.extract_strided_slice %6 {offsets = [0, 1, 0, 0], sizes = [1, 1, 32, 8], strides = [1, 1, 1, 1]} : vector<3x4x32x8xf32> to vector<1x1x32x8xf32>
    %45 = vector.shape_cast %44 : vector<1x1x32x8xf32> to vector<32x8xf32>
    %cst_26 = arith.constant dense<0.000000e+00> : vector<8x8xf32>
    %46 = tpu.matmul %1, %45, %cst_26 {dimension_numbers = #tpu.dot_dimension_numbers<[1], [0], [0], [1], [0, 0, 1, 1], [], []>} : vector<8x32xf32>, vector<32x8xf32>, vector<8x8xf32> -> vector<8x8xf32>
    %47 = vector.extract_strided_slice %7 {offsets = [0, 1, 0, 0], sizes = [1, 1, 1, 8], strides = [1, 1, 1, 1]} : vector<3x4x1x8xf32> to vector<1x1x1x8xf32>
    %48 = vector.shape_cast %47 : vector<1x1x1x8xf32> to vector<1x8xf32>
    %49 = vector.broadcast %48 : vector<1x8xf32> to vector<8x8xf32>
    %50 = arith.addf %46, %49 : vector<8x8xf32>
    %51 = vector.extract_strided_slice %6 {offsets = [1, 1, 0, 0], sizes = [1, 1, 32, 8], strides = [1, 1, 1, 1]} : vector<3x4x32x8xf32> to vector<1x1x32x8xf32>
    %52 = vector.shape_cast %51 : vector<1x1x32x8xf32> to vector<32x8xf32>
    %cst_27 = arith.constant dense<0.000000e+00> : vector<8x8xf32>
    %53 = tpu.matmul %3, %52, %cst_27 {dimension_numbers = #tpu.dot_dimension_numbers<[1], [0], [0], [1], [0, 0, 1, 1], [], []>} : vector<8x32xf32>, vector<32x8xf32>, vector<8x8xf32> -> vector<8x8xf32>
    %54 = vector.extract_strided_slice %7 {offsets = [1, 1, 0, 0], sizes = [1, 1, 1, 8], strides = [1, 1, 1, 1]} : vector<3x4x1x8xf32> to vector<1x1x1x8xf32>
    %55 = vector.shape_cast %54 : vector<1x1x1x8xf32> to vector<1x8xf32>
    %56 = vector.broadcast %55 : vector<1x8xf32> to vector<8x8xf32>
    %57 = arith.addf %53, %56 : vector<8x8xf32>
    %58 = vector.extract_strided_slice %6 {offsets = [2, 1, 0, 0], sizes = [1, 1, 32, 8], strides = [1, 1, 1, 1]} : vector<3x4x32x8xf32> to vector<1x1x32x8xf32>
    %59 = vector.shape_cast %58 : vector<1x1x32x8xf32> to vector<32x8xf32>
    %cst_28 = arith.constant dense<0.000000e+00> : vector<8x8xf32>
    %60 = tpu.matmul %5, %59, %cst_28 {dimension_numbers = #tpu.dot_dimension_numbers<[1], [0], [0], [1], [0, 0, 1, 1], [], []>} : vector<8x32xf32>, vector<32x8xf32>, vector<8x8xf32> -> vector<8x8xf32>
    %61 = vector.extract_strided_slice %7 {offsets = [2, 1, 0, 0], sizes = [1, 1, 1, 8], strides = [1, 1, 1, 1]} : vector<3x4x1x8xf32> to vector<1x1x1x8xf32>
    %62 = vector.shape_cast %61 : vector<1x1x1x8xf32> to vector<1x8xf32>
    %63 = vector.broadcast %62 : vector<1x8xf32> to vector<8x8xf32>
    %64 = arith.addf %60, %63 : vector<8x8xf32>
    %cst_29 = arith.constant dense<0.000000e+00> : vector<8x8xf32>
    %65 = tpu.matmul %50, %57, %cst_29 {dimension_numbers = #tpu.dot_dimension_numbers<[1], [1], [0], [0], [0, 0, 1, 0], [], []>} : vector<8x8xf32>, vector<8x8xf32>, vector<8x8xf32> -> vector<8x8xf32>
    %cst_30 = arith.constant dense<0xFF800000> : vector<8xf32>
    %66 = vector.multi_reduction <maximumf>, %65, %cst_30 [1] : vector<8x8xf32> to vector<8xf32>
    %67 = vector.shape_cast %66 : vector<8xf32> to vector<8x1xf32>
    %68 = vector.broadcast %67 : vector<8x1xf32> to vector<8x8xf32>
    %69 = arith.subf %65, %68 : vector<8x8xf32>
    %70 = math.exp %69 : vector<8x8xf32>
    %cst_31 = arith.constant dense<0.000000e+00> : vector<8xf32>
    %71 = vector.multi_reduction <add>, %70, %cst_31 [1] : vector<8x8xf32> to vector<8xf32>
    %72 = vector.shape_cast %71 : vector<8xf32> to vector<8x1xf32>
    %73 = vector.broadcast %72 : vector<8x1xf32> to vector<8x8xf32>
    %74 = arith.divf %70, %73 : vector<8x8xf32>
    %cst_32 = arith.constant dense<0.000000e+00> : vector<8x8xf32>
    %75 = tpu.matmul %74, %64, %cst_32 {dimension_numbers = #tpu.dot_dimension_numbers<[1], [0], [0], [1], [0, 0, 1, 1], [], []>} : vector<8x8xf32>, vector<8x8xf32>, vector<8x8xf32> -> vector<8x8xf32>
    %76 = vector.extract_strided_slice %8 {offsets = [1, 0, 0], sizes = [1, 8, 32], strides = [1, 1, 1]} : vector<4x8x32xf32> to vector<1x8x32xf32>
    %77 = vector.shape_cast %76 : vector<1x8x32xf32> to vector<8x32xf32>
    %cst_33 = arith.constant dense<0.000000e+00> : vector<8x32xf32>
    %78 = tpu.matmul %75, %77, %cst_33 {dimension_numbers = #tpu.dot_dimension_numbers<[1], [0], [0], [1], [0, 0, 1, 1], [], []>} : vector<8x8xf32>, vector<8x32xf32>, vector<8x32xf32> -> vector<8x32xf32>
    %79 = arith.addf %43, %78 : vector<8x32xf32>
    %80 = vector.extract_strided_slice %6 {offsets = [0, 2, 0, 0], sizes = [1, 1, 32, 8], strides = [1, 1, 1, 1]} : vector<3x4x32x8xf32> to vector<1x1x32x8xf32>
    %81 = vector.shape_cast %80 : vector<1x1x32x8xf32> to vector<32x8xf32>
    %cst_34 = arith.constant dense<0.000000e+00> : vector<8x8xf32>
    %82 = tpu.matmul %1, %81, %cst_34 {dimension_numbers = #tpu.dot_dimension_numbers<[1], [0], [0], [1], [0, 0, 1, 1], [], []>} : vector<8x32xf32>, vector<32x8xf32>, vector<8x8xf32> -> vector<8x8xf32>
    %83 = vector.extract_strided_slice %7 {offsets = [0, 2, 0, 0], sizes = [1, 1, 1, 8], strides = [1, 1, 1, 1]} : vector<3x4x1x8xf32> to vector<1x1x1x8xf32>
    %84 = vector.shape_cast %83 : vector<1x1x1x8xf32> to vector<1x8xf32>
    %85 = vector.broadcast %84 : vector<1x8xf32> to vector<8x8xf32>
    %86 = arith.addf %82, %85 : vector<8x8xf32>
    %87 = vector.extract_strided_slice %6 {offsets = [1, 2, 0, 0], sizes = [1, 1, 32, 8], strides = [1, 1, 1, 1]} : vector<3x4x32x8xf32> to vector<1x1x32x8xf32>
    %88 = vector.shape_cast %87 : vector<1x1x32x8xf32> to vector<32x8xf32>
    %cst_35 = arith.constant dense<0.000000e+00> : vector<8x8xf32>
    %89 = tpu.matmul %3, %88, %cst_35 {dimension_numbers = #tpu.dot_dimension_numbers<[1], [0], [0], [1], [0, 0, 1, 1], [], []>} : vector<8x32xf32>, vector<32x8xf32>, vector<8x8xf32> -> vector<8x8xf32>
    %90 = vector.extract_strided_slice %7 {offsets = [1, 2, 0, 0], sizes = [1, 1, 1, 8], strides = [1, 1, 1, 1]} : vector<3x4x1x8xf32> to vector<1x1x1x8xf32>
    %91 = vector.shape_cast %90 : vector<1x1x1x8xf32> to vector<1x8xf32>
    %92 = vector.broadcast %91 : vector<1x8xf32> to vector<8x8xf32>
    %93 = arith.addf %89, %92 : vector<8x8xf32>
    %94 = vector.extract_strided_slice %6 {offsets = [2, 2, 0, 0], sizes = [1, 1, 32, 8], strides = [1, 1, 1, 1]} : vector<3x4x32x8xf32> to vector<1x1x32x8xf32>
    %95 = vector.shape_cast %94 : vector<1x1x32x8xf32> to vector<32x8xf32>
    %cst_36 = arith.constant dense<0.000000e+00> : vector<8x8xf32>
    %96 = tpu.matmul %5, %95, %cst_36 {dimension_numbers = #tpu.dot_dimension_numbers<[1], [0], [0], [1], [0, 0, 1, 1], [], []>} : vector<8x32xf32>, vector<32x8xf32>, vector<8x8xf32> -> vector<8x8xf32>
    %97 = vector.extract_strided_slice %7 {offsets = [2, 2, 0, 0], sizes = [1, 1, 1, 8], strides = [1, 1, 1, 1]} : vector<3x4x1x8xf32> to vector<1x1x1x8xf32>
    %98 = vector.shape_cast %97 : vector<1x1x1x8xf32> to vector<1x8xf32>
    %99 = vector.broadcast %98 : vector<1x8xf32> to vector<8x8xf32>
    %100 = arith.addf %96, %99 : vector<8x8xf32>
    %cst_37 = arith.constant dense<0.000000e+00> : vector<8x8xf32>
    %101 = tpu.matmul %86, %93, %cst_37 {dimension_numbers = #tpu.dot_dimension_numbers<[1], [1], [0], [0], [0, 0, 1, 0], [], []>} : vector<8x8xf32>, vector<8x8xf32>, vector<8x8xf32> -> vector<8x8xf32>
    %cst_38 = arith.constant dense<0xFF800000> : vector<8xf32>
    %102 = vector.multi_reduction <maximumf>, %101, %cst_38 [1] : vector<8x8xf32> to vector<8xf32>
    %103 = vector.shape_cast %102 : vector<8xf32> to vector<8x1xf32>
    %104 = vector.broadcast %103 : vector<8x1xf32> to vector<8x8xf32>
    %105 = arith.subf %101, %104 : vector<8x8xf32>
    %106 = math.exp %105 : vector<8x8xf32>
    %cst_39 = arith.constant dense<0.000000e+00> : vector<8xf32>
    %107 = vector.multi_reduction <add>, %106, %cst_39 [1] : vector<8x8xf32> to vector<8xf32>
    %108 = vector.shape_cast %107 : vector<8xf32> to vector<8x1xf32>
    %109 = vector.broadcast %108 : vector<8x1xf32> to vector<8x8xf32>
    %110 = arith.divf %106, %109 : vector<8x8xf32>
    %cst_40 = arith.constant dense<0.000000e+00> : vector<8x8xf32>
    %111 = tpu.matmul %110, %100, %cst_40 {dimension_numbers = #tpu.dot_dimension_numbers<[1], [0], [0], [1], [0, 0, 1, 1], [], []>} : vector<8x8xf32>, vector<8x8xf32>, vector<8x8xf32> -> vector<8x8xf32>
    %112 = vector.extract_strided_slice %8 {offsets = [2, 0, 0], sizes = [1, 8, 32], strides = [1, 1, 1]} : vector<4x8x32xf32> to vector<1x8x32xf32>
    %113 = vector.shape_cast %112 : vector<1x8x32xf32> to vector<8x32xf32>
    %cst_41 = arith.constant dense<0.000000e+00> : vector<8x32xf32>
    %114 = tpu.matmul %111, %113, %cst_41 {dimension_numbers = #tpu.dot_dimension_numbers<[1], [0], [0], [1], [0, 0, 1, 1], [], []>} : vector<8x8xf32>, vector<8x32xf32>, vector<8x32xf32> -> vector<8x32xf32>
    %115 = arith.addf %79, %114 : vector<8x32xf32>
    %116 = vector.extract_strided_slice %6 {offsets = [0, 3, 0, 0], sizes = [1, 1, 32, 8], strides = [1, 1, 1, 1]} : vector<3x4x32x8xf32> to vector<1x1x32x8xf32>
    %117 = vector.shape_cast %116 : vector<1x1x32x8xf32> to vector<32x8xf32>
    %cst_42 = arith.constant dense<0.000000e+00> : vector<8x8xf32>
    %118 = tpu.matmul %1, %117, %cst_42 {dimension_numbers = #tpu.dot_dimension_numbers<[1], [0], [0], [1], [0, 0, 1, 1], [], []>} : vector<8x32xf32>, vector<32x8xf32>, vector<8x8xf32> -> vector<8x8xf32>
    %119 = vector.extract_strided_slice %7 {offsets = [0, 3, 0, 0], sizes = [1, 1, 1, 8], strides = [1, 1, 1, 1]} : vector<3x4x1x8xf32> to vector<1x1x1x8xf32>
    %120 = vector.shape_cast %119 : vector<1x1x1x8xf32> to vector<1x8xf32>
    %121 = vector.broadcast %120 : vector<1x8xf32> to vector<8x8xf32>
    %122 = arith.addf %118, %121 : vector<8x8xf32>
    %123 = vector.extract_strided_slice %6 {offsets = [1, 3, 0, 0], sizes = [1, 1, 32, 8], strides = [1, 1, 1, 1]} : vector<3x4x32x8xf32> to vector<1x1x32x8xf32>
    %124 = vector.shape_cast %123 : vector<1x1x32x8xf32> to vector<32x8xf32>
    %cst_43 = arith.constant dense<0.000000e+00> : vector<8x8xf32>
    %125 = tpu.matmul %3, %124, %cst_43 {dimension_numbers = #tpu.dot_dimension_numbers<[1], [0], [0], [1], [0, 0, 1, 1], [], []>} : vector<8x32xf32>, vector<32x8xf32>, vector<8x8xf32> -> vector<8x8xf32>
    %126 = vector.extract_strided_slice %7 {offsets = [1, 3, 0, 0], sizes = [1, 1, 1, 8], strides = [1, 1, 1, 1]} : vector<3x4x1x8xf32> to vector<1x1x1x8xf32>
    %127 = vector.shape_cast %126 : vector<1x1x1x8xf32> to vector<1x8xf32>
    %128 = vector.broadcast %127 : vector<1x8xf32> to vector<8x8xf32>
    %129 = arith.addf %125, %128 : vector<8x8xf32>
    %130 = vector.extract_strided_slice %6 {offsets = [2, 3, 0, 0], sizes = [1, 1, 32, 8], strides = [1, 1, 1, 1]} : vector<3x4x32x8xf32> to vector<1x1x32x8xf32>
    %131 = vector.shape_cast %130 : vector<1x1x32x8xf32> to vector<32x8xf32>
    %cst_44 = arith.constant dense<0.000000e+00> : vector<8x8xf32>
    %132 = tpu.matmul %5, %131, %cst_44 {dimension_numbers = #tpu.dot_dimension_numbers<[1], [0], [0], [1], [0, 0, 1, 1], [], []>} : vector<8x32xf32>, vector<32x8xf32>, vector<8x8xf32> -> vector<8x8xf32>
    %133 = vector.extract_strided_slice %7 {offsets = [2, 3, 0, 0], sizes = [1, 1, 1, 8], strides = [1, 1, 1, 1]} : vector<3x4x1x8xf32> to vector<1x1x1x8xf32>
    %134 = vector.shape_cast %133 : vector<1x1x1x8xf32> to vector<1x8xf32>
    %135 = vector.broadcast %134 : vector<1x8xf32> to vector<8x8xf32>
    %136 = arith.addf %132, %135 : vector<8x8xf32>
    %cst_45 = arith.constant dense<0.000000e+00> : vector<8x8xf32>
    %137 = tpu.matmul %122, %129, %cst_45 {dimension_numbers = #tpu.dot_dimension_numbers<[1], [1], [0], [0], [0, 0, 1, 0], [], []>} : vector<8x8xf32>, vector<8x8xf32>, vector<8x8xf32> -> vector<8x8xf32>
    %cst_46 = arith.constant dense<0xFF800000> : vector<8xf32>
    %138 = vector.multi_reduction <maximumf>, %137, %cst_46 [1] : vector<8x8xf32> to vector<8xf32>
    %139 = vector.shape_cast %138 : vector<8xf32> to vector<8x1xf32>
    %140 = vector.broadcast %139 : vector<8x1xf32> to vector<8x8xf32>
    %141 = arith.subf %137, %140 : vector<8x8xf32>
    %142 = math.exp %141 : vector<8x8xf32>
    %cst_47 = arith.constant dense<0.000000e+00> : vector<8xf32>
    %143 = vector.multi_reduction <add>, %142, %cst_47 [1] : vector<8x8xf32> to vector<8xf32>
    %144 = vector.shape_cast %143 : vector<8xf32> to vector<8x1xf32>
    %145 = vector.broadcast %144 : vector<8x1xf32> to vector<8x8xf32>
    %146 = arith.divf %142, %145 : vector<8x8xf32>
    %cst_48 = arith.constant dense<0.000000e+00> : vector<8x8xf32>
    %147 = tpu.matmul %146, %136, %cst_48 {dimension_numbers = #tpu.dot_dimension_numbers<[1], [0], [0], [1], [0, 0, 1, 1], [], []>} : vector<8x8xf32>, vector<8x8xf32>, vector<8x8xf32> -> vector<8x8xf32>
    %148 = vector.extract_strided_slice %8 {offsets = [3, 0, 0], sizes = [1, 8, 32], strides = [1, 1, 1]} : vector<4x8x32xf32> to vector<1x8x32xf32>
    %149 = vector.shape_cast %148 : vector<1x8x32xf32> to vector<8x32xf32>
    %cst_49 = arith.constant dense<0.000000e+00> : vector<8x32xf32>
    %150 = tpu.matmul %147, %149, %cst_49 {dimension_numbers = #tpu.dot_dimension_numbers<[1], [0], [0], [1], [0, 0, 1, 1], [], []>} : vector<8x8xf32>, vector<8x32xf32>, vector<8x32xf32> -> vector<8x32xf32>
    %151 = arith.addf %115, %150 : vector<8x32xf32>
    %c0_50 = arith.constant 0 : index
    %c0_51 = arith.constant 0 : index
    %152 = vector.load %arg7[%c0_50, %c0_51] : memref<1x32xf32, #tpu.memory_space<vmem>>, vector<1x32xf32>
    %153 = vector.broadcast %152 : vector<1x32xf32> to vector<8x32xf32>
    %154 = arith.addf %151, %153 : vector<8x32xf32>
    %c0_52 = arith.constant 0 : index
    %c0_53 = arith.constant 0 : index
    %c0_54 = arith.constant 0 : index
    %155 = vector.load %arg8[%c0_52, %c0_53, %c0_54] : memref<1x8x32xf32, #tpu.memory_space<vmem>>, vector<1x8x32xf32>
    %156 = vector.shape_cast %155 : vector<1x8x32xf32> to vector<8x32xf32>
    %157 = vector.shape_cast %154 : vector<8x32xf32> to vector<1x8x32xf32>
    tpu.vector_store %arg8[%c0_52, %c0_53, %c0_54], %157 {strides = array<i32>} : memref<1x8x32xf32, #tpu.memory_space<vmem>>, vector<1x8x32xf32>,
    return
  }
  func.func @transform_0(%arg0: i32) -> (i32, i32, i32) {
    %c0_i32 = arith.constant 0 : i32
    %c0_i32_0 = arith.constant 0 : i32
    %c0_i32_1 = arith.constant 0 : i32
    return %arg0, %c0_i32, %c0_i32_0 : i32, i32, i32
  }
  func.func @transform_1(%arg0: i32) -> (i32, i32, i32) {
    %c0_i32 = arith.constant 0 : i32
    %c0_i32_0 = arith.constant 0 : i32
    %c0_i32_1 = arith.constant 0 : i32
    return %arg0, %c0_i32, %c0_i32_0 : i32, i32, i32
  }
  func.func @transform_2(%arg0: i32) -> (i32, i32, i32) {
    %c0_i32 = arith.constant 0 : i32
    %c0_i32_0 = arith.constant 0 : i32
    %c0_i32_1 = arith.constant 0 : i32
    return %arg0, %c0_i32, %c0_i32_0 : i32, i32, i32
  }
  func.func @transform_3(%arg0: i32) -> (i32, i32, i32, i32) {
    %c0_i32 = arith.constant 0 : i32
    %c0_i32_0 = arith.constant 0 : i32
    %c0_i32_1 = arith.constant 0 : i32
    %c0_i32_2 = arith.constant 0 : i32
    %c0_i32_3 = arith.constant 0 : i32
    return %c0_i32, %c0_i32_0, %c0_i32_1, %c0_i32_2 : i32, i32, i32, i32
  }
  func.func @transform_4(%arg0: i32) -> (i32, i32, i32, i32) {
    %c0_i32 = arith.constant 0 : i32
    %c0_i32_0 = arith.constant 0 : i32
    %c0_i32_1 = arith.constant 0 : i32
    %c0_i32_2 = arith.constant 0 : i32
    %c0_i32_3 = arith.constant 0 : i32
    return %c0_i32, %c0_i32_0, %c0_i32_1, %c0_i32_2 : i32, i32, i32, i32
  }
  func.func @transform_5(%arg0: i32) -> (i32, i32, i32) {
    %c0_i32 = arith.constant 0 : i32
    %c0_i32_0 = arith.constant 0 : i32
    %c0_i32_1 = arith.constant 0 : i32
    %c0_i32_2 = arith.constant 0 : i32
    return %c0_i32, %c0_i32_0, %c0_i32_1 : i32, i32, i32
  }
  func.func @transform_6(%arg0: i32) -> (i32, i32) {
    %c0_i32 = arith.constant 0 : i32
    %c0_i32_0 = arith.constant 0 : i32
    %c0_i32_1 = arith.constant 0 : i32
    return %c0_i32, %c0_i32_0 : i32, i32
  }
  func.func @transform_7(%arg0: i32) -> (i32, i32, i32) {
    %c0_i32 = arith.constant 0 : i32
    %c0_i32_0 = arith.constant 0 : i32
    %c0_i32_1 = arith.constant 0 : i32
    return %arg0, %c0_i32, %c0_i32_0 : i32, i32, i32
  }
}

</mosaic_0001>

<bundles_post_ra>
// kernel: tpu_custom_call.1
= control target key start
LH: loop header
LB: loop body
LE: loop exit
PB: predicated region body
PF: predicated region fallthrough
CT: control target
= control target key end

     0   :  { %12 = vsyncpa [#allocation3], 0  ;;  %s3291_s0 = inlined_call_operand.vmem [shape: f32[2,8,32], index: 0, kind: input, shape index: {}]   ;;  %s3292_s1 = inlined_call_operand.vmem [shape: f32[2,8,32], index: 1, kind: input, shape index: {}]   ;;  %s3293_s2 = inlined_call_operand.vmem [shape: f32[2,8,32], index: 2, kind: input, shape index: {}]   ;;  %s3294_s3 = inlined_call_operand.vmem [shape: f32[3,4,32,8], index: 3, kind: input, shape index: {}]   ;;  %s3295_s4 = inlined_call_operand.vmem [shape: f32[3,4,1,8], index: 4, kind: input, shape index: {}]   ;;  %s3296_s5 = inlined_call_operand.vmem [shape: f32[4,8,32], index: 5, kind: input, shape index: {}]   ;;  %s3297_s6 = inlined_call_operand.vmem [shape: f32[1,32], index: 6, kind: input, shape index: {}]   ;;  %s3298_s7 = inlined_call_operand.hbm [shape: f32[2,8,32], index: 7, kind: output, shape index: {}]  }
   0x1   :  { %14 = vsyncpa [#allocation3 + $0x1], 0  ;;  %s2829_s24 = smov 0   ;;  %s2831_s25 = smov 0  }
   0x2   :  { %s2833_s26 = smov 0   ;;  %s2835_s27 = smov 0  }
   0x3 LB: > { %s2850_s28 = sadd.s32 4294967295, %s2784_s27   ;;  %s2338_s29 = sadd.s32 4294967294, %s2784_s27   ;;  %s2784_s27 = sphi %s2835_s27, %s3304_s27   ;;  %s2780_s26 = sphi %s2833_s26, %s3303_s26   ;;  %s2776_s25 = sphi %s2831_s25, %s3302_s25   ;;  %s2772_s24 = sphi %s2829_s24, %s3301_s24  }
   0x4   : > { %s2854_s30 = sadd.s32 1, %s2784_s27   ;;  %s189_s8 = sadd.s32 1, %s2780_s26 }
   0x5   : > { %s186_s9 = ssub.s32 %s2784_s27, %s2854_s30  ;;  %p199_p0 = scmp.ne.s32.totalorder %s2780_s26, %s2776_s25 }
   0x6   : > { %p187_p1 = scmp.eq.s32.totalorder %s186_s9, 0  ;;  %p200_p2 = scmp.eq.s32.totalorder %s2850_s28, 1 }
   0x7   : > { %p205_p3 = scmp.ne.s32.totalorder %s2776_s25, %s2772_s24  ;;  %p206_p4 = scmp.eq.s32.totalorder %s2338_s29, 1 }
   0x8   : > { %s2865_s10 = scalar_select %p187_p1, %s2780_s26, %s189_s8  }
   0x9   : > { %p2867_p5 = por %p200_p2, %p199_p0  ;;  %p2871_p6 = por %p206_p4, %p205_p3 }
   0xa   : > { %p2341_p7 = scmp.ge.s32.totalorder %s2784_s27, 1  ;;  %p257_p8 = scmp.lt.s32.totalorder %s2784_s27, 3 }
   0xc   : > { %p258_p9 = pnand %p2341_p7, %p257_p8 }
   0xd   : > { %p296_p10 = scmp.lt.s32.totalorder (!%p258_p9), %s2850_s28, 1  ;;  %s293_s13 = sand.u32 (!%p258_p9), 1, %s2776_s25  }
   0xe   : > { %261 = sbr.rel (%p258_p9) target bundleno = 3651 (0xe43), region = 48  ;;  %s2342_s14 = sshll.u32 (!%p258_p9), %s293_s13, 3 }
   0xf   : > { %s295_s18 = scalar_lea.vmem (!%p258_p9), [#allocation2], %s2342_s14  ;;  %s2242_s23 = scalar_lea.sflag (!%p258_p9), [#allocation3], %s293_s13 }
  0x10   : > { %s2255_s19 = sshll.u32 (!%p258_p9), %s295_s18, 4  ;;  %s2256_s19 = int_to_ptr.vmem [resolvable:$true] %s2255_s19 }
  0x11   : > { %s2724_s29 = scalar_lea.vmem (!%p258_p9), %s2256_s19, 128 }
  0x12   : > { %p2725_p11 = scmp.ne.s32.totalorder (!%p258_p9), %s2256_s19, %s2724_s29 }
  0x13   : > { %v330_v0 = vld [vmem:[%s3294_s3 + $0x98] sm:$0xff]  ;;  %v2786_v2 = vmov 0.0   ;;  %v329_v3 = vld [vmem:[%s3294_s3 + $0x90] sm:$0xff]  ;;  %s297_s21 = scalar_select %p296_p10, %s2850_s28, 1  ;;  %v328_v5 = vld [vmem:[%s3294_s3 + $0x88] sm:$0xff]  ;;  %vm381_vm0 = vcmask 261120  }
  0x14   : > { %v314_v1 = vld [vmem:[%s3294_s3 + $0x18] sm:$0xff]  ;;  %2486 = vmatprep.subr.mxu1 %v2786_v2  ;;  %2475 = vmatprep.subr.mxu0 %v2786_v2  ;;  %v313_v4 = vld [vmem:[%s3294_s3 + $0x10] sm:$0xff]  ;;  %v312_v6 = vld [vmem:[%s3294_s3 + $0x8] sm:$0xff]  ;;  %vm2787_vm1 = vmmov 0   ;;  %vm613_vm2 = vcmask 64512   ;;  %p2726_p12 = pnand %p2725_p11, %p2867_p5 }
  0x15   : > { %2487 = vmatpush3.msra.mxu1 %v330_v0  ;;  %2476 = vmatpush3.msra.mxu0 %v314_v1  ;;  %s2901_s9 = sshll.u32 %s297_s21, 3  ;;  %v327_v7 = vld [vmem:[%s3294_s3 + $0x80] sm:$0xff]  ;;  %v346_v19 = vld [vmem:[%s3294_s3 + $0x118] sm:$0xff]  ;;  %v345_v20 = vld [vmem:[%s3294_s3 + $0x110] sm:$0xff] }
  0x16   : > { %2488 = vmatprep.subr.mxu1 %v2786_v2  ;;  %2477 = vmatprep.subr.mxu0 %v2786_v2  ;;  %s303_s17 = scalar_lea.vmem %s3292_s1, %s2901_s9  ;;  %s299_s20 = scalar_lea.vmem %s3291_s0, %s2901_s9  ;;  %v311_v8 = vld [vmem:[%s3294_s3] sm:$0xff]  ;;  %v344_v21 = vld [vmem:[%s3294_s3 + $0x108] sm:$0xff]  ;;  %v318_v36 = vld [vmem:[%s3294_s3 + $0x38] sm:$0xff] }
  0x17   : > { %2489 = vmatpush3.msra.mxu1 %v329_v3  ;;  %2478 = vmatpush3.msra.mxu0 %v313_v4  ;;  %v2921_v9 = vld [vmem:[%s303_s17] sm:$0xff]  ;;  %s307_s22 = scalar_lea.vmem %s3293_s2, %s2901_s9  ;;  %v2350_v32 = vld [vmem:[%s3295_s4 + $0x8] ss:$0 sm:$0xff]  ;;  %v317_v37 = vld [vmem:[%s3294_s3 + $0x30] sm:$0xff]  ;;  %s2388_s17 = sshll.u32 %s2850_s28, 7 }
  0x18   : > { %2490 = vmatprep.subr.mxu1 %v2786_v2  ;;  %2479 = vmatprep.subr.mxu0 %v2786_v2  ;;  %v2923_v10 = vld [vmem:[%s299_s20] sm:$0xff]  ;;  %v316_v38 = vld [vmem:[%s3294_s3 + $0x28] sm:$0xff]  ;;  %v334_v43 = vld [vmem:[%s3294_s3 + $0xb8] sm:$0xff]  ;;  %p2727_p13 = pneg %p2726_p12  ;;  %s2788_s9 = smov [#allocation2]  }
  0x19   : > { %2491 = vmatpush3.msra.mxu1 %v328_v5  ;;  %2480 = vmatpush3.msra.mxu0 %v312_v6  ;;  %v2348_v11 = vld [vmem:[%s3295_s4 + $0x4] ss:$0 sm:$0xff]  ;;  %v2346_v12 = vld [vmem:[%s3295_s4] ss:$0 sm:$0xff]  ;;  %v333_v44 = vld [vmem:[%s3294_s3 + $0xb0] sm:$0xff]  ;;  %s2728_s28 = sshll.u32 %s2788_s9, 4  ;;  %s2729_s28 = int_to_ptr.vmem [resolvable:$false] %s2728_s28 }
  0x1a   : > { %2492 = vmatprep.subr.mxu1 %v2786_v2  ;;  %2481 = vmatprep.subr.mxu0 %v2786_v2  ;;  %v343_v22 = vld [vmem:[%s3294_s3 + $0x100] sm:$0xff]  ;;  %v332_v45 = vld [vmem:[%s3294_s3 + $0xa8] sm:$0xff]  ;;  %v350_v57 = vld [vmem:[%s3294_s3 + $0x138] sm:$0xff]  ;;  %s2730_s8 = scalar_lea.vmem %s2729_s28, 256  ;;  %p2731_p0 = scmp.lt.s32.totalorder %s2256_s19, %s2729_s28 }
  0x1b   : > { %2493 = vmatpush3.msra.mxu1 %v327_v7  ;;  %2494 = vmatprep.mubr.msk.f32.mxu1 %vm2787_vm1, %v2786_v2  ;;  %v2968_v23 = vld [vmem:[%s307_s22] sm:$0xff]  ;;  %v349_v58 = vld [vmem:[%s3294_s3 + $0x130] sm:$0xff]  ;;  %v348_v59 = vld [vmem:[%s3294_s3 + $0x128] sm:$0xff]  ;;  %s2253_s22 = scalar_lea.hbm %s3298_s7, %s2388_s17  ;;  %p2732_p1 = scmp.lt.s32.totalorder %s2730_s8, %s2724_s29 }
  0x1c   : > { %2482 = vmatpush3.msra.mxu0 %v311_v8  ;;  %2483 = vmatprep.mubr.msk.f32.mxu0 %vm2787_vm1, %v2786_v2  ;;  %v315_v39 = vld [vmem:[%s3294_s3 + $0x20] sm:$0xff]  ;;  %v2359_v6 = vld [vmem:[%s3295_s4 + $0x9] ss:$0 sm:$0xff] }
  0x1d   : > { %2495 = vmatmul.mubr.msk.f32.vlgmr.msra.gmra.mxu1 %vm381_vm0, %v2921_v9  ;;  %2484 = vmatmul.mubr.msk.f32.vlgmr.msra.gmra.mxu0 %vm381_vm0, %v2923_v10  ;;  %v331_v46 = vld [vmem:[%s3294_s3 + $0xa0] sm:$0xff]  ;;  %p2733_p2 = por %p2732_p1, %p2731_p0 }
  0x1e   : > { %2508 = vmatprep.subr.mxu1 %v2786_v2  ;;  %2510 = vmatprep.mubr.msk.f32.mxu1 %vm2787_vm1, %v2786_v2  ;;  %v2357_v51 = vld [vmem:[%s3295_s4 + $0x5] ss:$0 sm:$0xff]  ;;  %v2355_v52 = vld [vmem:[%s3295_s4 + $0x1] ss:$0 sm:$0xff] }
  0x1f   : > { %2497 = vmatprep.subr.mxu0 %v2786_v2  ;;  %2505 = vmatprep.mubr.msk.f32.mxu0 %vm2787_vm1, %v2786_v2  ;;  %v347_v60 = vld [vmem:[%s3294_s3 + $0x120] sm:$0xff]  ;;  %p2734_p3 = pnand %p2733_p2, %p2727_p13 }
  0x20   : > { %2498 = vmatpush3.msra.mxu0 %v346_v19  ;;  %v336_v19 = vld [vmem:[%s3294_s3 + $0xc8] sm:$0xff] }
  0x21   : > { %2499 = vmatprep.subr.mxu0 %v2786_v2 }
  0x22   : > { %2500 = vmatpush3.msra.mxu0 %v345_v20  ;;  %v335_v20 = vld [vmem:[%s3294_s3 + $0xc0] sm:$0xff] }
  0x23   : > { %2501 = vmatprep.subr.mxu0 %v2786_v2 }
  0x24   : > { %2502 = vmatpush3.msra.mxu0 %v344_v21  ;;  %v322_v21 = vld [vmem:[%s3294_s3 + $0x58] sm:$0xff] }
  0x25   : > { %2503 = vmatprep.subr.mxu0 %v2786_v2 }
  0x26   : > { %2504 = vmatpush3.msra.mxu0 %v343_v22 }
  0x27   : > { %2506 = vmatmul.mubr.msk.f32.vlgmr.msra.gmra.mxu0 %vm381_vm0, %v2968_v23  ;;  %2518 = vmatprep.subr.mxu0 %v2786_v2 }
  0x28   : > { %2526 = vmatprep.mubr.msk.f32.mxu0 %vm2787_vm1, %v2786_v2  ;;  %2519 = vmatpush3.msra.mxu0 %v318_v36  ;;  %v2366_v36 = vld [vmem:[%s3295_s4 + $0x2] ss:$0 sm:$0xff] }
  0x29   : > { %2520 = vmatprep.subr.mxu0 %v2786_v2 }
  0x2a   : > { %2521 = vmatpush3.msra.mxu0 %v317_v37 }
  0x2b   : > { %2522 = vmatprep.subr.mxu0 %v2786_v2 }
  0x2c   : > { %2523 = vmatpush3.msra.mxu0 %v316_v38 }
  0x2d   : > { %2524 = vmatprep.subr.mxu0 %v2786_v2 }
  0x2e   : > { %2525 = vmatpush3.msra.mxu0 %v315_v39 }
  0x2f   : > { %2527 = vmatmul.mubr.msk.f32.vlgmr.msra.gmra.mxu0 %vm381_vm0, %v2923_v10  ;;  %2540 = vmatprep.subr.mxu0 %v2786_v2 }
  0x30   : > { %2548 = vmatprep.mubr.msk.f32.mxu0 %vm2787_vm1, %v2786_v2  ;;  %2541 = vmatpush3.msra.mxu0 %v350_v57 }
  0x31   : > { %2542 = vmatprep.subr.mxu0 %v2786_v2 }
  0x32   : > { %2543 = vmatpush3.msra.mxu0 %v349_v58 }
  0x33   : > { %2544 = vmatprep.subr.mxu0 %v2786_v2 }
  0x34   : > { %2545 = vmatpush3.msra.mxu0 %v348_v59 }
  0x35   : > { %2546 = vmatprep.subr.mxu0 %v2786_v2 }
  0x36   : > { %2547 = vmatpush3.msra.mxu0 %v347_v60  ;;  %v326_v60 = vld [vmem:[%s3294_s3 + $0x78] sm:$0xff] }
  0x37   : > { %2549 = vmatmul.mubr.msk.f32.vlgmr.msra.gmra.mxu0 %vm381_vm0, %v2968_v23  ;;  %2561 = vmatprep.subr.mxu0 %v2786_v2 }
  0x38   : > { %2563 = vmatprep.mubr.msk.f32.mxu0 %vm2787_vm1, %v2786_v2 }
  0xdd   : > { %v530_v13 = vpop.f32.mrf.mxu1  ;;  %v451_v14 = vpop.f32.mrf.mxu0 }
  0xde   : > { %v531_v15 = vadd.f32 %v2348_v11, %v530_v13  ;;  %v452_v16 = vadd.f32 %v2346_v12, %v451_v14  ;;  %v372_v12 = vld [vmem:[%s3296_s5 + $0x8] sm:$0xff] }
  0xdf   : > { %v2496_v17 = vpop.f32.mrf.mxu1  ;;  %v2485_v18 = vpop.f32.mrf.mxu0  ;;  %2562 = vmatpush3.msra.mxu0 %v372_v12 }
  0xe0   : > { %2509 = vmatpush3.xpose.msk.msra.mxu1 %vm613_vm2, %v531_v15  ;;  %2571 = vmatprep.subr.mxu0 %v2786_v2  ;;  %v338_v17 = vld [vmem:[%s3294_s3 + $0xd8] sm:$0xff]  ;;  %v337_v18 = vld [vmem:[%s3294_s3 + $0xd0] sm:$0xff] }
  0xe1   : > { %2513 = vmatprep.subr.mxu1 %v2786_v2 }
  0xe3   : > { %2511 = vmatmul.mubr.msk.f32.vlgmr.msra.gmra.mxu1 %vm613_vm2, %v452_v16  ;;  %v371_v16 = vld [vmem:[%s3296_s5] sm:$0xff] }
  0xe4   : > { %2515 = vmatprep.mubr.msk.f32.mxu1 %vm2787_vm1, %v2786_v2 }
  0xe7   : > { %v609_v33 = vpop.f32.mrf.mxu0 }
  0xe8   : > { %v610_v34 = vadd.f32 %v2350_v32, %v609_v33 }
  0xe9   : > { %v2507_v35 = vpop.f32.mrf.mxu0 }
  0xea   : > { %2514 = vmatpush3.msra.mxu1 %v610_v34 }
  0xeb   : > { %2529 = vmatprep.subr.mxu1 %v2786_v2 }
  0xef   : > { %v846_v47 = vpop.f32.mrf.mxu0 }
  0xf0   : > { %v847_v55 = vadd.f32 %v2355_v52, %v846_v47  ;;  %v2370_v52 = vld [vmem:[%s3295_s4 + $0xa] ss:$0 sm:$0xff] }
  0xf1   : > { %v2528_v48 = vpop.f32.mrf.mxu0 }
  0xf7   : > { %v998_v7 = vpop.f32.mrf.mxu0 }
  0xf8   : > { %v999_v8 = vadd.f32 %v2359_v6, %v998_v7 }
  0xf9   : > { %v2550_v11 = vpop.f32.mrf.mxu0 }
 0x1a3   : > { %v686_v24 = vpop.f32.mrf.mxu1 }
 0x1a4   : > { %v690_v25 = vsel %vm613_vm2, %v686_v24, -inf }
 0x1a5   : > { %691 = vmax.xlane.f32.xlu0 %v690_v25  ;;  %v2512_v26 = vpop.f32.mrf.mxu1 }
 0x1a6   : > { %v320_v26 = vld [vmem:[%s3294_s3 + $0x48] sm:$0xff] }
 0x22e   : > { %v692_v27 = vpop.xlane.xlu0 %691 }
 0x22f   : > { %v693_v28 = vsub.f32 %v686_v24, %v692_v27  ;;  %v321_v24 = vld [vmem:[%s3294_s3 + $0x50] sm:$0xff] }
 0x231   : > { %v694_v29 = vmul.f32 1.442695, %v693_v28  ;;  %v319_v28 = vld [vmem:[%s3294_s3 + $0x40] sm:$0xff] }
 0x233   : > { %2708 = vpow2.f32 %v694_v29 }
 0x240   : > { %v2709_v30 = vpop.eup %2708 }
 0x241   : > { %v696_v31 = vsel %vm613_vm2, %v2709_v30, 0.0 }
 0x242   : > { %697 = vadd.xlane.f32.xlu0 %v696_v31 }
 0x2cb   : > { %v698_v40 = vpop.xlane.xlu0 %697 }
 0x2cc   : > { %2710 = vrcp.f32 %v698_v40  ;;  %v354_v40 = vld [vmem:[%s3294_s3 + $0x158] sm:$0xff] }
 0x2d9   : > { %v2711_v41 = vpop.eup %2710 }
 0x2da   : > { %v700_v42 = vmul.f32 %v2711_v41, %v2709_v30  ;;  %v2368_v30 = vld [vmem:[%s3295_s4 + $0x6] ss:$0 sm:$0xff]  ;;  %v353_v41 = vld [vmem:[%s3294_s3 + $0x150] sm:$0xff] }
 0x2dc   : > { %2516 = vmatmul.mubr.msk.f32.vlgmr.msra.gmra.mxu1 %vm613_vm2, %v700_v42  ;;  %v352_v42 = vld [vmem:[%s3294_s3 + $0x148] sm:$0xff] }
 0x2dd   : > { %2530 = vmatpush3.msra.mxu1 %v334_v43  ;;  %2537 = vmatprep.mubr.msk.f32.mxu1 %vm2787_vm1, %v2786_v2  ;;  %v351_v43 = vld [vmem:[%s3294_s3 + $0x140] sm:$0xff] }
 0x2de   : > { %2531 = vmatprep.subr.mxu1 %v2786_v2 }
 0x2df   : > { %2532 = vmatpush3.msra.mxu1 %v333_v44 }
 0x2e0   : > { %2533 = vmatprep.subr.mxu1 %v2786_v2 }
 0x2e1   : > { %2534 = vmatpush3.msra.mxu1 %v332_v45 }
 0x2e2   : > { %2535 = vmatprep.subr.mxu1 %v2786_v2 }
 0x2e3   : > { %2536 = vmatpush3.msra.mxu1 %v331_v46 }
 0x2e4   : > { %2538 = vmatmul.mubr.msk.f32.vlgmr.msra.gmra.mxu1 %vm381_vm0, %v2921_v9  ;;  %2551 = vmatprep.subr.mxu1 %v2786_v2 }
 0x2e5   : > { %2553 = vmatprep.mubr.msk.f32.mxu1 %vm2787_vm1, %v2786_v2 }
 0x39c   : > { %v770_v49 = vpop.f32.mrf.mxu1 }
 0x39e   : > { %v2517_v50 = vpop.f32.mrf.mxu1 }
 0x3a4   : > { %v922_v53 = vpop.f32.mrf.mxu1 }
 0x3a5   : > { %v923_v54 = vadd.f32 %v2357_v51, %v922_v53 }
 0x3a6   : > { %v2539_v56 = vpop.f32.mrf.mxu1 }
 0x3a7   : > { %2552 = vmatpush3.xpose.msk.msra.mxu1 %vm613_vm2, %v923_v54  ;;  %v373_v56 = vld [vmem:[%s3296_s5 + $0x10] sm:$0xff] }
 0x3a8   : > { %2556 = vmatprep.subr.mxu1 %v2786_v2 }
 0x3aa   : > { %2554 = vmatmul.mubr.msk.f32.vlgmr.msra.gmra.mxu1 %vm613_vm2, %v847_v55 }
 0x3ab   : > { %2558 = vmatprep.mubr.msk.f32.mxu1 %vm2787_vm1, %v2786_v2  ;;  %2557 = vmatpush3.msra.mxu1 %v999_v8 }
 0x3ac   : > { %2566 = vmatprep.subr.mxu1 %v2786_v2 }
 0x46a   : > { %v1074_v61 = vpop.f32.mrf.mxu1 }
 0x46b   : > { %v1078_v62 = vsel %vm613_vm2, %v1074_v61, -inf }
 0x46c   : > { %1079 = vmax.xlane.f32.xlu1 %v1078_v62  ;;  %v2555_v63 = vpop.f32.mrf.mxu1  ;;  %v324_v62 = vld [vmem:[%s3294_s3 + $0x68] sm:$0xff] }
 0x46d   : > { %v323_v63 = vld [vmem:[%s3294_s3 + $0x60] sm:$0xff] }
 0x4f5   : > { %v1080_v0 = vpop.xlane.xlu1 %1079 }
 0x4f6   : > { %v1081_v1 = vsub.f32 %v1074_v61, %v1080_v0  ;;  %v325_v61 = vld [vmem:[%s3294_s3 + $0x70] sm:$0xff]  ;;  %v342_v0 = vld [vmem:[%s3294_s3 + $0xf8] sm:$0xff] }
 0x4f8   : > { %v1082_v3 = vmul.f32 1.442695, %v1081_v1 }
 0x4fa   : > { %2712 = vpow2.f32 %v1082_v3  ;;  %v341_v3 = vld [vmem:[%s3294_s3 + $0xf0] sm:$0xff] }
 0x507   : > { %v2713_v4 = vpop.eup %2712 }
 0x508   : > { %v1084_v5 = vsel %vm613_vm2, %v2713_v4, 0.0 }
 0x509   : > { %1085 = vadd.xlane.f32.xlu1 %v1084_v5  ;;  %v339_v5 = vld [vmem:[%s3294_s3 + $0xe0] sm:$0xff] }
 0x592   : > { %v1086_v13 = vpop.xlane.xlu1 %1085 }
 0x593   : > { %2714 = vrcp.f32 %v1086_v13 }
 0x5a0   : > { %v2715_v14 = vpop.eup %2714 }
 0x5a1   : > { %v1088_v15 = vmul.f32 %v2715_v14, %v2713_v4  ;;  %v2378_v14 = vld [vmem:[%s3295_s4 + $0x7] ss:$0 sm:$0xff] }
 0x5a3   : > { %2559 = vmatmul.mubr.msk.f32.vlgmr.msra.gmra.mxu1 %vm613_vm2, %v1088_v15 }
 0x5a4   : > { %2567 = vmatpush3.msra.mxu1 %v371_v16  ;;  %2568 = vmatprep.mubr.msk.f32.mxu1 %vm2787_vm1, %v2786_v2 }
 0x5a5   : > { %2582 = vmatprep.subr.mxu1 %v2786_v2 }
 0x5a7   : > { %2569 = vmatmul.mubr.msk.f32.vlgmr.msra.gmra.mxu1 %vm613_vm2, %v770_v49 }
 0x5a8   : > { %2583 = vmatpush3.msra.mxu1 %v338_v17  ;;  %2590 = vmatprep.mubr.msk.f32.mxu1 %vm2787_vm1, %v2786_v2 }
 0x5a9   : > { %2584 = vmatprep.subr.mxu1 %v2786_v2 }
 0x5aa   : > { %2585 = vmatpush3.msra.mxu1 %v337_v18 }
 0x5ab   : > { %2586 = vmatprep.subr.mxu1 %v2786_v2 }
 0x5ac   : > { %2587 = vmatpush3.msra.mxu1 %v336_v19  ;;  %v358_v19 = vld [vmem:[%s3294_s3 + $0x178] sm:$0xff] }
 0x5ad   : > { %2588 = vmatprep.subr.mxu1 %v2786_v2 }
 0x5ae   : > { %2589 = vmatpush3.msra.mxu1 %v335_v20  ;;  %v357_v20 = vld [vmem:[%s3294_s3 + $0x170] sm:$0xff] }
 0x5af   : > { %2591 = vmatmul.mubr.msk.f32.vlgmr.msra.gmra.mxu1 %vm381_vm0, %v2921_v9  ;;  %2604 = vmatprep.subr.mxu1 %v2786_v2 }
 0x5b0   : > { %2606 = vmatprep.mubr.msk.f32.mxu1 %vm2787_vm1, %v2786_v2 }
 0x663   : > { %v1158_v22 = vpop.f32.mrf.mxu1 }
 0x664   : > { %2564 = vmatmul.mubr.msk.f32.vlgmr.msra.gmra.mxu0 %vm613_vm2, %v1158_v22  ;;  %v355_v22 = vld [vmem:[%s3294_s3 + $0x160] sm:$0xff] }
 0x665   : > { %2572 = vmatpush3.msra.mxu0 %v322_v21  ;;  %v2560_v25 = vpop.f32.mrf.mxu1  ;;  %2579 = vmatprep.mubr.msk.f32.mxu0 %vm2787_vm1, %v2786_v2  ;;  %v356_v21 = vld [vmem:[%s3294_s3 + $0x168] sm:$0xff] }
 0x666   : > { %2573 = vmatprep.subr.mxu0 %v2786_v2 }
 0x667   : > { %2574 = vmatpush3.msra.mxu0 %v321_v24  ;;  %v3109_v27 = vpop.f32.mrf.mxu1 }
 0x668   : > { %2575 = vmatprep.subr.mxu0 %v2786_v2 }
 0x669   : > { %2576 = vmatpush3.msra.mxu0 %v320_v26  ;;  %v2570_v29 = vpop.f32.mrf.mxu1 }
 0x66a   : > { %2577 = vmatprep.subr.mxu0 %v2786_v2 }
 0x66b   : > { %2578 = vmatpush3.msra.mxu0 %v319_v28 }
 0x66c   : > { %2580 = vmatmul.mubr.msk.f32.vlgmr.msra.gmra.mxu0 %vm381_vm0, %v2923_v10  ;;  %2593 = vmatprep.subr.mxu0 %v2786_v2 }
 0x66d   : > { %2601 = vmatprep.mubr.msk.f32.mxu0 %vm2787_vm1, %v2786_v2  ;;  %2594 = vmatpush3.msra.mxu0 %v354_v40 }
 0x66e   : > { %2595 = vmatprep.subr.mxu0 %v2786_v2 }
 0x66f   : > { %v1456_v31 = vpop.f32.mrf.mxu1  ;;  %2596 = vmatpush3.msra.mxu0 %v353_v41  ;;  %v2386_v41 = vld [vmem:[%s3297_s6] ss:$0 sm:$0xff] }
 0x670   : > { %v1457_v32 = vadd.f32 %v2368_v30, %v1456_v31  ;;  %2597 = vmatprep.subr.mxu0 %v2786_v2 }
 0x671   : > { %v2592_v33 = vpop.f32.mrf.mxu1  ;;  %2598 = vmatpush3.msra.mxu0 %v352_v42 }
 0x672   : > { %2605 = vmatpush3.xpose.msk.msra.mxu1 %vm613_vm2, %v1457_v32  ;;  %2599 = vmatprep.subr.mxu0 %v2786_v2 }
 0x673   : > { %2609 = vmatprep.subr.mxu1 %v2786_v2  ;;  %2600 = vmatpush3.msra.mxu0 %v351_v43 }
 0x674   : > { %2602 = vmatmul.mubr.msk.f32.vlgmr.msra.gmra.mxu0 %vm381_vm0, %v2968_v23  ;;  %2614 = vmatprep.subr.mxu0 %v2786_v2 }
 0x675   : > { %2616 = vmatprep.mubr.msk.f32.mxu0 %vm2787_vm1, %v2786_v2  ;;  %2615 = vmatpush3.msra.mxu0 %v373_v56 }
 0x676   : > { %2630 = vmatprep.subr.mxu0 %v2786_v2 }
 0x724   : > { %v3126_v34 = vpop.f32.mrf.mxu0 }
 0x725   : > { %v1305_v8 = vadd.f32 %v3109_v27, %v3126_v34  ;;  %v374_v34 = vld [vmem:[%s3296_s5 + $0x18] sm:$0xff] }
 0x726   : > { %v2565_v35 = vpop.f32.mrf.mxu0 }
 0x72c   : > { %v1380_v37 = vpop.f32.mrf.mxu0 }
 0x72d   : > { %v1381_v38 = vadd.f32 %v2366_v36, %v1380_v37 }
 0x72e   : > { %v2581_v39 = vpop.f32.mrf.mxu0 }
 0x72f   : > { %2607 = vmatmul.mubr.msk.f32.vlgmr.msra.gmra.mxu1 %vm613_vm2, %v1381_v38 }
 0x730   : > { %2611 = vmatprep.mubr.msk.f32.mxu1 %vm2787_vm1, %v2786_v2 }
 0x734   : > { %v1532_v53 = vpop.f32.mrf.mxu0 }
 0x735   : > { %v1533_v54 = vadd.f32 %v2370_v52, %v1532_v53 }
 0x736   : > { %v2603_v55 = vpop.f32.mrf.mxu0 }
 0x737   : > { %2610 = vmatpush3.msra.mxu1 %v1533_v54 }
 0x738   : > { %2619 = vmatprep.subr.mxu1 %v2786_v2 }
 0x7ef   : > { %v1608_v44 = vpop.f32.mrf.mxu1 }
 0x7f0   : > { %v1612_v45 = vsel %vm613_vm2, %v1608_v44, -inf }
 0x7f1   : > { %1613 = vmax.xlane.f32.xlu0 %v1612_v45  ;;  %v2608_v46 = vpop.f32.mrf.mxu1 }
 0x87a   : > { %v1614_v47 = vpop.xlane.xlu0 %1613 }
 0x87b   : > { %v1615_v48 = vsub.f32 %v1608_v44, %v1614_v47 }
 0x87d   : > { %v1616_v49 = vmul.f32 1.442695, %v1615_v48 }
 0x87f   : > { %2716 = vpow2.f32 %v1616_v49 }
 0x88c   : > { %v2717_v50 = vpop.eup %2716 }
 0x88d   : > { %v1618_v51 = vsel %vm613_vm2, %v2717_v50, 0.0 }
 0x88e   : > { %1619 = vadd.xlane.f32.xlu1 %v1618_v51 }
 0x917   : > { %v1620_v57 = vpop.xlane.xlu1 %1619 }
 0x918   : > { %2718 = vrcp.f32 %v1620_v57 }
 0x925   : > { %v2719_v58 = vpop.eup %2718 }
 0x926   : > { %v1622_v59 = vmul.f32 %v2719_v58, %v2717_v50 }
 0x928   : > { %2612 = vmatmul.mubr.msk.f32.vlgmr.msra.gmra.mxu1 %vm613_vm2, %v1622_v59 }
 0x929   : > { %2627 = vmatprep.mubr.msk.f32.mxu1 %vm2787_vm1, %v2786_v2  ;;  %2620 = vmatpush3.msra.mxu1 %v326_v60 }
 0x92a   : > { %2621 = vmatprep.subr.mxu1 %v2786_v2 }
 0x92b   : > { %2622 = vmatpush3.msra.mxu1 %v325_v61 }
 0x92c   : > { %2623 = vmatprep.subr.mxu1 %v2786_v2 }
 0x92d   : > { %2624 = vmatpush3.msra.mxu1 %v324_v62 }
 0x92e   : > { %2625 = vmatprep.subr.mxu1 %v2786_v2 }
 0x92f   : > { %2626 = vmatpush3.msra.mxu1 %v323_v63 }
 0x930   : > { %2628 = vmatmul.mubr.msk.f32.vlgmr.msra.gmra.mxu1 %vm381_vm0, %v2923_v10  ;;  %2641 = vmatprep.subr.mxu1 %v2786_v2  ;;  %v340_v10 = vld [vmem:[%s3294_s3 + $0xe8] sm:$0xff] }
 0x931   : > { %2649 = vmatprep.mubr.msk.f32.mxu1 %vm2787_vm1, %v2786_v2  ;;  %2642 = vmatpush3.msra.mxu1 %v358_v19 }
 0x932   : > { %2643 = vmatprep.subr.mxu1 %v2786_v2 }
 0x933   : > { %2644 = vmatpush3.msra.mxu1 %v357_v20 }
 0x934   : > { %2645 = vmatprep.subr.mxu1 %v2786_v2 }
 0x935   : > { %2646 = vmatpush3.msra.mxu1 %v356_v21 }
 0x936   : > { %2647 = vmatprep.subr.mxu1 %v2786_v2 }
 0x937   : > { %2648 = vmatpush3.msra.mxu1 %v355_v22 }
 0x938   : > { %2650 = vmatmul.mubr.msk.f32.vlgmr.msra.gmra.mxu1 %vm381_vm0, %v2968_v23  ;;  %2662 = vmatprep.subr.mxu1 %v2786_v2  ;;  %v2380_v23 = vld [vmem:[%s3295_s4 + $0xb] ss:$0 sm:$0xff] }
 0x939   : > { %2664 = vmatprep.mubr.msk.f32.mxu1 %vm2787_vm1, %v2786_v2  ;;  %2663 = vmatpush3.msra.mxu1 %v374_v34 }
 0x9e8   : > { %v1692_v1 = vpop.f32.mrf.mxu1 }
 0x9e9   : > { %2617 = vmatmul.mubr.msk.f32.vlgmr.msra.gmra.mxu0 %vm613_vm2, %v1692_v1 }
 0x9ea   : > { %2631 = vmatpush3.msra.mxu0 %v342_v0  ;;  %v2613_v4 = vpop.f32.mrf.mxu1  ;;  %2638 = vmatprep.mubr.msk.f32.mxu0 %vm2787_vm1, %v2786_v2 }
 0x9eb   : > { %2632 = vmatprep.subr.mxu0 %v2786_v2 }
 0x9ec   : > { %2633 = vmatpush3.msra.mxu0 %v341_v3 }
 0x9ed   : > { %2634 = vmatprep.subr.mxu0 %v2786_v2 }
 0x9ee   : > { %2635 = vmatpush3.msra.mxu0 %v340_v10 }
 0x9ef   : > { %2636 = vmatprep.subr.mxu0 %v2786_v2 }
 0x9f0   : > { %2637 = vmatpush3.msra.mxu0 %v339_v5  ;;  %v1842_v6 = vpop.f32.mrf.mxu1 }
 0x9f1   : > { %2639 = vmatmul.mubr.msk.f32.vlgmr.msra.gmra.mxu0 %vm381_vm0, %v2921_v9  ;;  %2652 = vmatprep.subr.mxu0 %v2786_v2  ;;  %v2376_v9 = vld [vmem:[%s3295_s4 + $0x3] ss:$0 sm:$0xff] }
 0x9f2   : > { %2654 = vmatprep.mubr.msk.f32.mxu0 %vm2787_vm1, %v2786_v2  ;;  %v2629_v7 = vpop.f32.mrf.mxu1  ;;  %v1843_v17 = vadd.f32 %v2376_v9, %v1842_v6 }
 0x9f8   : > { %v1994_v32 = vpop.f32.mrf.mxu1 }
 0x9fa   : > { %v2651_v33 = vpop.f32.mrf.mxu1 }
 0xaa9   : > { %v1765_v11 = vpop.f32.mrf.mxu0 }
 0xaaa   : > { %v1769_v12 = vadd.f32 %v1765_v11, %v1305_v8 }
 0xaab   : > { %v2618_v13 = vpop.f32.mrf.mxu0 }
 0xab1   : > { %v1918_v15 = vpop.f32.mrf.mxu0 }
 0xab2   : > { %v1919_v16 = vadd.f32 %v2378_v14, %v1918_v15 }
 0xab3   : > { %v2640_v18 = vpop.f32.mrf.mxu0 }
 0xab4   : > { %2653 = vmatpush3.xpose.msk.msra.mxu0 %vm613_vm2, %v1919_v16 }
 0xab5   : > { %2657 = vmatprep.subr.mxu0 %v2786_v2 }
 0xab7   : > { %2655 = vmatmul.mubr.msk.f32.vlgmr.msra.gmra.mxu0 %vm613_vm2, %v1843_v17 }
 0xab8   : > { %2659 = vmatprep.mubr.msk.f32.mxu0 %vm2787_vm1, %v2786_v2  ;;  %v1995_v2 = vadd.f32 %v2380_v23, %v1994_v32 }
 0xaba   : > { %2658 = vmatpush3.msra.mxu0 %v1995_v2 }
 0xb77   : > { %v2070_v24 = vpop.f32.mrf.mxu0 }
 0xb78   : > { %v2074_v25 = vsel %vm613_vm2, %v2070_v24, -inf }
 0xb79   : > { %2075 = vmax.xlane.f32.xlu0 %v2074_v25  ;;  %v2656_v26 = vpop.f32.mrf.mxu0 }
 0xc02   : > { %v2076_v27 = vpop.xlane.xlu0 %2075 }
 0xc03   : > { %v2077_v28 = vsub.f32 %v2070_v24, %v2076_v27 }
 0xc05   : > { %v2078_v29 = vmul.f32 1.442695, %v2077_v28 }
 0xc07   : > { %2720 = vpow2.f32 %v2078_v29 }
 0xc14   : > { %v2721_v30 = vpop.eup %2720 }
 0xc15   : > { %v2080_v31 = vsel %vm613_vm2, %v2721_v30, 0.0 }
 0xc16   : > { %2081 = vadd.xlane.f32.xlu1 %v2080_v31 }
 0xc9f   : > { %v2082_v35 = vpop.xlane.xlu1 %2081 }
 0xca0   : > { %2722 = vrcp.f32 %v2082_v35 }
 0xcad   : > { %v2723_v36 = vpop.eup %2722 }
 0xcae   : > { %v2084_v37 = vmul.f32 %v2723_v36, %v2721_v30 }
 0xcb0   : > { %2660 = vmatmul.mubr.msk.f32.vlgmr.msra.gmra.mxu0 %vm613_vm2, %v2084_v37 }
 0xd70   : > { %v2154_v38 = vpop.f32.mrf.mxu0 }
 0xd71   : > { %2665 = vmatmul.mubr.msk.f32.vlgmr.msra.gmra.mxu1 %vm613_vm2, %v2154_v38 }
 0xd72   : > { %v2661_v39 = vpop.f32.mrf.mxu0 }
 0xe31   : > { %v2227_v40 = vpop.f32.mrf.mxu1 }
 0xe32   : > { %v2231_v42 = vadd.f32 %v2227_v40, %v1769_v12 }
 0xe33   : > { %v2666_v43 = vpop.f32.mrf.mxu1 }
 0xe34   : > { %v2239_v44 = vadd.f32 %v2386_v41, %v2231_v42 }
 0xe36   : > { %2240 = vst.msk [vmem:[%s295_s18] sm:$0xff] %vm381_vm0, %v2239_v44 }
 0xe37   : > { %2737 = shalt.err (!%p2734_p3)
}
 0xe38   : > { %s2738_s14 = scalar_lea.hbm %s2253_s22, 128  ;;  %s2742_s16 = scalar_lea.hbm %s3298_s7, 256 }
 0xe39   : > { %p2739_p4 = scmp.ne.s32.totalorder %s2253_s22, %s2738_s14  ;;  %p2743_p9 = scmp.lt.s32.totalorder %s2253_s22, %s3298_s7 }
 0xe3a   : > { %p2744_p10 = scmp.lt.s32.totalorder %s2742_s16, %s2738_s14 }
 0xe3b   : > { %p2740_p7 = pnand %p2739_p4, %p2867_p5 }
 0xe3c   : > { %p2745_p11 = por %p2744_p10, %p2743_p9 }
 0xe3d   : > { %p2741_p8 = pneg %p2740_p7 }
 0xe3f   : > { %p2746_p12 = pnand %p2745_p11, %p2741_p8 }
 0xe41   : > { %2749 = shalt.err (!%p2746_p12)
}
 0xe42   : > { %2667 = dma.vmem_to_hbm [thread:$0]  (%p2867_p5), %s2256_s19, 128, %s2253_s22, %s2242_s23  }
 0xe43 PF: > { %p2673_p13 = scmp.ge.s32.totalorder %s2784_s27, 2  ;;  %s2267_s20 = sand.u32 1, %s2772_s24  }
 0xe44   : > { %s2268_s21 = scalar_lea.sflag [#allocation3], %s2267_s20 }
 0xe45   : > { %p2670_p0 = pnand %p2673_p13, %p2871_p6 }
 0xe47   : > { %p2671_p1 = pneg %p2670_p0 }
 0xe49   : > { %2767 = dma.done.wait (%p2671_p1), %s2268_s21, 128  }
 0xe4a   : > { %2769 = vsyncadd (%p2671_p1), %s2268_s21, 4294967168  ;;  %p17_p2 = scmp.ge.s32.totalorder %s2854_s30, 4   ;;  %s3301_s24 = smov %s2776_s25 }
 0xe4b   : > { %s3302_s25 = smov %s2780_s26  ;;  %s3303_s26 = smov %s2865_s10 }
 0xe4c   : > { %s3304_s27 = smov %s2854_s30  ;;  %19 = sbr.rel (!%p17_p2) target bundleno = 3 (0x3), region = 89 }
 0xe51   :  { %2273 = vsyncpa [#allocation3], 1 }
 0xe52   :  { %2275 = vsyncpa [#allocation3 + $0x1], 1 }

</bundles_post_ra>
